<compile_context>
chip_gen: v5e
topology: v5e:2x2
jax: 0.10.0
libtpu: 0.0.40
codegen_flags: <defaults>
</compile_context>

<pallas_src>
import numpy as np
import jax
import jax.numpy as jnp
from jax import lax
from jax.experimental import pallas as pl
from jax.experimental.pallas import tpu as pltpu

B, C, H, W = 8, 4, 16, 16
D = C * H * W                 # 1024
NUM_CLASSES = 16
BETA_PARAM = 1.0


# ---------------------------------------------------------------------------
# Fused kernel: logits -> logit-space mixup -> log_softmax -> mixed CE
# ---------------------------------------------------------------------------
def _fused_mixup_net_ce_kernel(beta_ref, x_ref, w_ref, b_ref, perm_ref, tgt_ref,
                               out_ref):
    # The whole batch lives in this single invocation; the (1/B) mean
    # normalization and the per-row softmax rely on that (do not tile batch).
    batch = x_ref.shape[0]
    beta = beta_ref[0]                                               # SMEM scalar

    # Un-mixed logits (bias added after mixing): L = x @ W  -> [B, NUM_CLASSES]
    logits = jnp.dot(x_ref[...], w_ref[...], preferred_element_type=jnp.float32)

    # Permutation matrix P[i, j] = (j == perm[i]);  P @ A == A[perm]  (exact).
    cols_b = lax.broadcasted_iota(jnp.int32, (batch, batch), 1)
    p_mat = (cols_b == perm_ref[...]).astype(jnp.float32)            # [B, B]

    # Mixup in logit space (net is linear => identical to net(mixed_image)).
    logits_perm = jnp.dot(p_mat, logits, preferred_element_type=jnp.float32)
    logits_mixed = beta * logits + (1.0 - beta) * logits_perm + b_ref[...]

    # log_softmax (max-subtracted, numerically stable)
    m = jnp.max(logits_mixed, axis=-1, keepdims=True)
    z = logits_mixed - m
    lse = jnp.log(jnp.sum(jnp.exp(z), axis=-1, keepdims=True))
    logp = z - lse                                                    # [B, NC]

    # One-hot targets built in-kernel; shuffled-target one-hot = P @ one-hot.
    cols_c = lax.broadcasted_iota(jnp.int32, (batch, NUM_CLASSES), 1)
    t1 = (cols_c == tgt_ref[...]).astype(jnp.float32)                 # [B, NC]
    t2 = jnp.dot(p_mat, t1, preferred_element_type=jnp.float32)       # onehot(target[perm])
    t_mix = beta * t1 + (1.0 - beta) * t2

    # beta*CE(pred, target) + (1-beta)*CE(pred, shuffled_target), mean over batch.
    loss = -jnp.sum(t_mix * logp) * (1.0 / batch)
    out_ref[...] = jnp.reshape(loss, (1, 1))


def mixup_criterion_forward(image, target, w, b, perm, beta):
    """image: [B,C,H,W] f32, target: [B] i32, perm: [B] i32, beta: python float."""
    x = image.reshape(B, D)                         # lane/sublane-dense slab
    beta_arr = jnp.asarray([beta], dtype=jnp.float32)
    perm_col = perm.reshape(B, 1).astype(jnp.int32)
    tgt_col = target.reshape(B, 1).astype(jnp.int32)

    loss = pl.pallas_call(
        _fused_mixup_net_ce_kernel,
        out_shape=jax.ShapeDtypeStruct((1, 1), jnp.float32),
        in_specs=[
            pl.BlockSpec(memory_space=pltpu.MemorySpace.SMEM),        # beta scalar
            pl.BlockSpec(memory_space=pltpu.MemorySpace.VMEM),        # image slab [B, D]
            pl.BlockSpec(memory_space=pltpu.MemorySpace.VMEM),        # W [D, NC]
            pl.BlockSpec(memory_space=pltpu.MemorySpace.VMEM),        # bias [1, NC]
            pl.BlockSpec(memory_space=pltpu.MemorySpace.VMEM),        # perm column [B, 1]
            pl.BlockSpec(memory_space=pltpu.MemorySpace.VMEM),        # target column [B, 1]
        ],
        out_specs=pl.BlockSpec(memory_space=pltpu.MemorySpace.VMEM),
    )(beta_arr, x, w, b, perm_col, tgt_col)
    return loss[0, 0]


# ---------------------------------------------------------------------------
# Pure-JAX reference (image-space mixup, exactly the PyTorch forward semantics)
# ---------------------------------------------------------------------------
def mixup_criterion_reference(image, target, w, b, perm, beta):
    shuf = image[perm]
    mixed = beta * image + (1.0 - beta) * shuf
    logits = mixed.reshape(B, D) @ w + b[0]
    logp = jax.nn.log_softmax(logits, axis=-1)
    t1 = jax.nn.one_hot(target, NUM_CLASSES, dtype=jnp.float32)
    t2 = jax.nn.one_hot(target[perm], NUM_CLASSES, dtype=jnp.float32)
    ce1 = -jnp.mean(jnp.sum(t1 * logp, axis=-1))
    ce2 = -jnp.mean(jnp.sum(t2 * logp, axis=-1))
    return beta * ce1 + (1.0 - beta) * ce2


if __name__ == "__main__":
    key = jax.random.PRNGKey(0)
    k_img, k_tgt, k_perm, k_w, k_b = jax.random.split(key, 5)

    image = jax.random.normal(k_img, (B, C, H, W), dtype=jnp.float32)
    target = jax.random.randint(k_tgt, (B,), 0, NUM_CLASSES, dtype=jnp.int32)
    perm = jax.random.permutation(k_perm, B).astype(jnp.int32)

    # Deterministic "net" parameters (synthetic linear classifier).
    w = jax.random.normal(k_w, (D, NUM_CLASSES), dtype=jnp.float32) * 0.02
    b = jax.random.normal(k_b, (1, NUM_CLASSES), dtype=jnp.float32) * 0.01

    # Deterministic host-side draw of beta ~ Beta(beta_param, beta_param),
    # mirroring np.random.beta in get_mixup_data().
    beta = float(np.random.default_rng(0).beta(BETA_PARAM, BETA_PARAM))

    loss = mixup_criterion_forward(image, target, w, b, perm, beta)
    jax.block_until_ready(loss)

    ref = mixup_criterion_reference(image, target, w, b, perm, beta)
    np.testing.assert_allclose(np.asarray(loss), np.asarray(ref), rtol=2e-3, atol=2e-3)

    print("KERNEL_OK")
</pallas_src>

<mosaic_0001>
module attributes {stable_mosaic.version = 11 : i64} {
  func.func @_fused_mixup_net_ce_kernel(%arg0: memref<1xf32, #tpu.memory_space<smem>>, %arg1: memref<8x1024xf32, #tpu.memory_space<vmem>>, %arg2: memref<1024x16xf32, #tpu.memory_space<vmem>>, %arg3: memref<1x16xf32, #tpu.memory_space<vmem>>, %arg4: memref<8x1xi32, #tpu.memory_space<vmem>>, %arg5: memref<8x1xi32, #tpu.memory_space<vmem>>, %arg6: memref<1x1xf32, #tpu.memory_space<vmem>>) attributes {dimension_semantics = [], scalar_prefetch = 0 : i64, scratch_operands = 0 : i64, tpu.core_type = #tpu.core_type<tc>} {
    %c0 = arith.constant 0 : index
    %0 = memref.load %arg0[%c0] : memref<1xf32, #tpu.memory_space<smem>>
    %c0_0 = arith.constant 0 : index
    %c0_1 = arith.constant 0 : index
    %1 = vector.load %arg1[%c0_0, %c0_1] : memref<8x1024xf32, #tpu.memory_space<vmem>>, vector<8x1024xf32>
    %c0_2 = arith.constant 0 : index
    %c0_3 = arith.constant 0 : index
    %2 = vector.load %arg2[%c0_2, %c0_3] : memref<1024x16xf32, #tpu.memory_space<vmem>>, vector<1024x16xf32>
    %cst = arith.constant dense<0.000000e+00> : vector<8x16xf32>
    %3 = tpu.matmul %1, %2, %cst {dimension_numbers = #tpu.dot_dimension_numbers<[1], [0], [0], [1], [0, 0, 1, 1], [], []>} : vector<8x1024xf32>, vector<1024x16xf32>, vector<8x16xf32> -> vector<8x16xf32>
    %4 = tpu.iota {dimensions = array<i32: 1>} : vector<8x8xi32>
    %c0_4 = arith.constant 0 : index
    %c0_5 = arith.constant 0 : index
    %5 = vector.load %arg4[%c0_4, %c0_5] : memref<8x1xi32, #tpu.memory_space<vmem>>, vector<8x1xi32>
    %6 = vector.broadcast %5 : vector<8x1xi32> to vector<8x8xi32>
    %7 = arith.cmpi eq, %4, %6 : vector<8x8xi32>
    %8 = arith.extui %7 : vector<8x8xi1> to vector<8x8xi32>
    %9 = arith.sitofp %8 : vector<8x8xi32> to vector<8x8xf32>
    %cst_6 = arith.constant dense<0.000000e+00> : vector<8x16xf32>
    %10 = tpu.matmul %9, %3, %cst_6 {dimension_numbers = #tpu.dot_dimension_numbers<[1], [0], [0], [1], [0, 0, 1, 1], [], []>} : vector<8x8xf32>, vector<8x16xf32>, vector<8x16xf32> -> vector<8x16xf32>
    %11 = vector.broadcast %0 : f32 to vector<8x16xf32>
    %12 = arith.mulf %11, %3 : vector<8x16xf32>
    %cst_7 = arith.constant 1.000000e+00 : f32
    %13 = arith.subf %cst_7, %0 : f32
    %14 = vector.broadcast %13 : f32 to vector<8x16xf32>
    %15 = arith.mulf %14, %10 : vector<8x16xf32>
    %16 = arith.addf %12, %15 : vector<8x16xf32>
    %c0_8 = arith.constant 0 : index
    %c0_9 = arith.constant 0 : index
    %17 = vector.load %arg3[%c0_8, %c0_9] : memref<1x16xf32, #tpu.memory_space<vmem>>, vector<1x16xf32>
    %18 = vector.broadcast %17 : vector<1x16xf32> to vector<8x16xf32>
    %19 = arith.addf %16, %18 : vector<8x16xf32>
    %cst_10 = arith.constant dense<0xFF800000> : vector<8xf32>
    %20 = vector.multi_reduction <maximumf>, %19, %cst_10 [1] : vector<8x16xf32> to vector<8xf32>
    %21 = vector.shape_cast %20 : vector<8xf32> to vector<8x1xf32>
    %22 = vector.broadcast %21 : vector<8x1xf32> to vector<8x16xf32>
    %23 = arith.subf %19, %22 : vector<8x16xf32>
    %24 = math.exp %23 : vector<8x16xf32>
    %cst_11 = arith.constant dense<0.000000e+00> : vector<8xf32>
    %25 = vector.multi_reduction <add>, %24, %cst_11 [1] : vector<8x16xf32> to vector<8xf32>
    %26 = vector.shape_cast %25 : vector<8xf32> to vector<8x1xf32>
    %27 = math.log %26 : vector<8x1xf32>
    %28 = vector.broadcast %27 : vector<8x1xf32> to vector<8x16xf32>
    %29 = arith.subf %23, %28 : vector<8x16xf32>
    %30 = tpu.iota {dimensions = array<i32: 1>} : vector<8x16xi32>
    %c0_12 = arith.constant 0 : index
    %c0_13 = arith.constant 0 : index
    %31 = vector.load %arg5[%c0_12, %c0_13] : memref<8x1xi32, #tpu.memory_space<vmem>>, vector<8x1xi32>
    %32 = vector.broadcast %31 : vector<8x1xi32> to vector<8x16xi32>
    %33 = arith.cmpi eq, %30, %32 : vector<8x16xi32>
    %34 = arith.extui %33 : vector<8x16xi1> to vector<8x16xi32>
    %35 = arith.sitofp %34 : vector<8x16xi32> to vector<8x16xf32>
    %cst_14 = arith.constant dense<0.000000e+00> : vector<8x16xf32>
    %36 = tpu.matmul %9, %35, %cst_14 {dimension_numbers = #tpu.dot_dimension_numbers<[1], [0], [0], [1], [0, 0, 1, 1], [], []>} : vector<8x8xf32>, vector<8x16xf32>, vector<8x16xf32> -> vector<8x16xf32>
    %37 = vector.broadcast %0 : f32 to vector<8x16xf32>
    %38 = arith.mulf %37, %35 : vector<8x16xf32>
    %cst_15 = arith.constant 1.000000e+00 : f32
    %39 = arith.subf %cst_15, %0 : f32
    %40 = vector.broadcast %39 : f32 to vector<8x16xf32>
    %41 = arith.mulf %40, %36 : vector<8x16xf32>
    %42 = arith.addf %38, %41 : vector<8x16xf32>
    %43 = arith.mulf %42, %29 : vector<8x16xf32>
    %44 = vector.shape_cast %43 : vector<8x16xf32> to vector<1x8x16xf32>
    %cst_16 = arith.constant dense<0.000000e+00> : vector<1xf32>
    %45 = vector.multi_reduction <add>, %44, %cst_16 [1, 2] : vector<1x8x16xf32> to vector<1xf32>
    %46 = vector.shape_cast %45 : vector<1xf32> to vector<1x1x1xf32>
    %47 = vector.extract %46[0, 0, 0] : f32 from vector<1x1x1xf32>
    %cst_17 = arith.constant 0.000000e+00 : f32
    %48 = arith.subf %cst_17, %47 : f32
    %cst_18 = arith.constant 1.250000e-01 : f32
    %49 = arith.mulf %48, %cst_18 : f32
    %50 = vector.broadcast %49 : f32 to vector<1x1xf32>
    %c0_19 = arith.constant 0 : index
    %c0_20 = arith.constant 0 : index
    %51 = vector.load %arg6[%c0_19, %c0_20] : memref<1x1xf32, #tpu.memory_space<vmem>>, vector<1x1xf32>
    tpu.vector_store %arg6[%c0_19, %c0_20], %50 {strides = array<i32>} : memref<1x1xf32, #tpu.memory_space<vmem>>, vector<1x1xf32>,
    return
  }
}

</mosaic_0001>

<bundles_post_ra>
// kernel: tpu_custom_call.1
= control target key start
LH: loop header
LB: loop body
LE: loop exit
PB: predicated region body
PF: predicated region fallthrough
CT: control target
= control target key end

     0   :  { %v484_v3 = vmov 0   ;;  %s954_s0 = inlined_call_operand.<no memory space> [shape: f32[1], index: 0, kind: input, shape index: {}]   ;;  %s955_s1 = inlined_call_operand.vmem [shape: f32[8,1024], index: 1, kind: input, shape index: {}]   ;;  %s956_s2 = inlined_call_operand.vmem [shape: f32[1024,16], index: 2, kind: input, shape index: {}]   ;;  %s957_s3 = inlined_call_operand.vmem [shape: f32[1,16], index: 3, kind: input, shape index: {}]   ;;  %s958_s4 = inlined_call_operand.vmem [shape: s32[8,1], index: 4, kind: input, shape index: {}]   ;;  %s959_s5 = inlined_call_operand.vmem [shape: s32[8,1], index: 5, kind: input, shape index: {}]   ;;  %s960_s6 = inlined_call_operand.hbm [shape: f32[1,1], index: 6, kind: output, shape index: {}]  }
   0x1   :  { %v49_v0 = vld [vmem:[%s956_s2 + $0x78] sm:$0xff]  ;;  %v324_v2 = vld [vmem:[%s958_s4] sm:$0xff]  ;;  %452 = vset.pattern.permute.xlu0 %v484_v3  ;;  %v48_v4 = vld [vmem:[%s956_s2 + $0x70] sm:$0xff] }
   0x2   :  { %v81_v1 = vld [vmem:[%s956_s2 + $0x178] sm:$0xff]  ;;  %162 = vmatpush.msra.mxu0 %v49_v0  ;;  %v80_v6 = vld [vmem:[%s956_s2 + $0x170] sm:$0xff]  ;;  %326 = vperm.xlu0 %452, %v324_v2   ;;  %v47_v8 = vld [vmem:[%s956_s2 + $0x68] sm:$0xff] }
   0x3   :  { %v65_v5 = vld [vmem:[%s956_s2 + $0xf8] sm:$0xff]  ;;  %202 = vmatpush.msra.mxu2 %v81_v1  ;;  %v64_v9 = vld [vmem:[%s956_s2 + $0xf0] sm:$0xff]  ;;  %v79_v10 = vld [vmem:[%s956_s2 + $0x168] sm:$0xff] }
   0x4   :  { %v97_v7 = vld [vmem:[%s956_s2 + $0x1f8] sm:$0xff]  ;;  %163 = vmatpush.msra.mxu0 %v48_v4  ;;  %182 = vmatpush.msra.mxu1 %v65_v5  ;;  %v96_v11 = vld [vmem:[%s956_s2 + $0x1f0] sm:$0xff]  ;;  %v46_v12 = vld [vmem:[%s956_s2 + $0x60] sm:$0xff] }
   0x5   :  { %203 = vmatpush.msra.mxu2 %v80_v6  ;;  %222 = vmatpush.msra.mxu3 %v97_v7  ;;  %v63_v13 = vld [vmem:[%s956_s2 + $0xe8] sm:$0xff]  ;;  %v78_v14 = vld [vmem:[%s956_s2 + $0x160] sm:$0xff]  ;;  %v45_v16 = vld [vmem:[%s956_s2 + $0x58] sm:$0xff] }
   0x6   :  { %164 = vmatpush.msra.mxu0 %v47_v8  ;;  %183 = vmatpush.msra.mxu1 %v64_v9  ;;  %v95_v15 = vld [vmem:[%s956_s2 + $0x1e8] sm:$0xff]  ;;  %v62_v17 = vld [vmem:[%s956_s2 + $0xe0] sm:$0xff]  ;;  %v77_v18 = vld [vmem:[%s956_s2 + $0x158] sm:$0xff] }
   0x7   :  { %204 = vmatpush.msra.mxu2 %v79_v10  ;;  %223 = vmatpush.msra.mxu3 %v96_v11  ;;  %v94_v19 = vld [vmem:[%s956_s2 + $0x1e0] sm:$0xff]  ;;  %v44_v21 = vld [vmem:[%s956_s2 + $0x50] sm:$0xff]  ;;  %v61_v22 = vld [vmem:[%s956_s2 + $0xd8] sm:$0xff] }
   0x8   :  { %165 = vmatpush.msra.mxu0 %v46_v12  ;;  %184 = vmatpush.msra.mxu1 %v63_v13  ;;  %v379_v20 = vld [vmem:[%s959_s5] sm:$0xff]  ;;  %v76_v23 = vld [vmem:[%s956_s2 + $0x150] sm:$0xff]  ;;  %v93_v24 = vld [vmem:[%s956_s2 + $0x1d8] sm:$0xff] }
   0x9   :  { %205 = vmatpush.msra.mxu2 %v78_v14  ;;  %224 = vmatpush.msra.mxu3 %v95_v15  ;;  %v43_v25 = vld [vmem:[%s956_s2 + $0x48] sm:$0xff]  ;;  %v60_v26 = vld [vmem:[%s956_s2 + $0xd0] sm:$0xff]  ;;  %v42_v29 = vld [vmem:[%s956_s2 + $0x40] sm:$0xff] }
   0xa   :  { %166 = vmatpush.msra.mxu0 %v45_v16  ;;  %185 = vmatpush.msra.mxu1 %v62_v17  ;;  %v75_v27 = vld [vmem:[%s956_s2 + $0x148] sm:$0xff]  ;;  %v92_v28 = vld [vmem:[%s956_s2 + $0x1d0] sm:$0xff]  ;;  %v74_v31 = vld [vmem:[%s956_s2 + $0x140] sm:$0xff] }
   0xb   :  { %206 = vmatpush.msra.mxu2 %v77_v18  ;;  %225 = vmatpush.msra.mxu3 %v94_v19  ;;  %v59_v30 = vld [vmem:[%s956_s2 + $0xc8] sm:$0xff]  ;;  %v41_v33 = vld [vmem:[%s956_s2 + $0x38] sm:$0xff]  ;;  %v58_v34 = vld [vmem:[%s956_s2 + $0xc0] sm:$0xff] }
   0xc   :  { %381 = vperm.xlu0 %452, %v379_v20   ;;  %167 = vmatpush.msra.mxu0 %v44_v21  ;;  %v91_v32 = vld [vmem:[%s956_s2 + $0x1c8] sm:$0xff]  ;;  %v73_v35 = vld [vmem:[%s956_s2 + $0x138] sm:$0xff]  ;;  %v90_v36 = vld [vmem:[%s956_s2 + $0x1c0] sm:$0xff] }
   0xd   :  { %186 = vmatpush.msra.mxu1 %v61_v22  ;;  %207 = vmatpush.msra.mxu2 %v76_v23  ;;  %v40_v37 = vld [vmem:[%s956_s2 + $0x30] sm:$0xff]  ;;  %v57_v38 = vld [vmem:[%s956_s2 + $0xb8] sm:$0xff]  ;;  %v39_v41 = vld [vmem:[%s956_s2 + $0x28] sm:$0xff] }
   0xe   :  { %226 = vmatpush.msra.mxu3 %v93_v24  ;;  %168 = vmatpush.msra.mxu0 %v43_v25  ;;  %v72_v39 = vld [vmem:[%s956_s2 + $0x130] sm:$0xff]  ;;  %v89_v40 = vld [vmem:[%s956_s2 + $0x1b8] sm:$0xff]  ;;  %v71_v43 = vld [vmem:[%s956_s2 + $0x128] sm:$0xff] }
   0xf   :  { %187 = vmatpush.msra.mxu1 %v60_v26  ;;  %208 = vmatpush.msra.mxu2 %v75_v27  ;;  %v56_v42 = vld [vmem:[%s956_s2 + $0xb0] sm:$0xff]  ;;  %v38_v45 = vld [vmem:[%s956_s2 + $0x20] sm:$0xff]  ;;  %v55_v46 = vld [vmem:[%s956_s2 + $0xa8] sm:$0xff] }
  0x10   :  { %227 = vmatpush.msra.mxu3 %v92_v28  ;;  %169 = vmatpush.msra.mxu0 %v42_v29  ;;  %v88_v44 = vld [vmem:[%s956_s2 + $0x1b0] sm:$0xff]  ;;  %v70_v47 = vld [vmem:[%s956_s2 + $0x120] sm:$0xff]  ;;  %v87_v48 = vld [vmem:[%s956_s2 + $0x1a8] sm:$0xff] }
  0x11   :  { %188 = vmatpush.msra.mxu1 %v59_v30  ;;  %209 = vmatpush.msra.mxu2 %v74_v31  ;;  %v37_v49 = vld [vmem:[%s956_s2 + $0x18] sm:$0xff]  ;;  %v54_v50 = vld [vmem:[%s956_s2 + $0xa0] sm:$0xff]  ;;  %v36_v53 = vld [vmem:[%s956_s2 + $0x10] sm:$0xff] }
  0x12   :  { %228 = vmatpush.msra.mxu3 %v91_v32  ;;  %170 = vmatpush.msra.mxu0 %v41_v33  ;;  %v69_v51 = vld [vmem:[%s956_s2 + $0x118] sm:$0xff]  ;;  %v86_v52 = vld [vmem:[%s956_s2 + $0x1a0] sm:$0xff]  ;;  %v68_v55 = vld [vmem:[%s956_s2 + $0x110] sm:$0xff] }
  0x13   :  { %189 = vmatpush.msra.mxu1 %v58_v34  ;;  %210 = vmatpush.msra.mxu2 %v73_v35  ;;  %v53_v54 = vld [vmem:[%s956_s2 + $0x98] sm:$0xff]  ;;  %v35_v57 = vld [vmem:[%s956_s2 + $0x8] sm:$0xff]  ;;  %v52_v58 = vld [vmem:[%s956_s2 + $0x90] sm:$0xff] }
  0x14   :  { %229 = vmatpush.msra.mxu3 %v90_v36  ;;  %171 = vmatpush.msra.mxu0 %v40_v37  ;;  %v85_v56 = vld [vmem:[%s956_s2 + $0x198] sm:$0xff]  ;;  %v67_v59 = vld [vmem:[%s956_s2 + $0x108] sm:$0xff]  ;;  %v84_v60 = vld [vmem:[%s956_s2 + $0x190] sm:$0xff] }
  0x15   :  { %190 = vmatpush.msra.mxu1 %v57_v38  ;;  %211 = vmatpush.msra.mxu2 %v72_v39  ;;  %v34_v61 = vld [vmem:[%s956_s2] sm:$0xff]  ;;  %v51_v62 = vld [vmem:[%s956_s2 + $0x88] sm:$0xff]  ;;  %v113_v1 = vld [vmem:[%s956_s2 + $0x278] sm:$0xff] }
  0x16   :  { %230 = vmatpush.msra.mxu3 %v89_v40  ;;  %172 = vmatpush.msra.mxu0 %v39_v41  ;;  %v66_v63 = vld [vmem:[%s956_s2 + $0x100] sm:$0xff]  ;;  %v83_v0 = vld [vmem:[%s956_s2 + $0x188] sm:$0xff]  ;;  %v145_v2 = vld [vmem:[%s956_s2 + $0x378] sm:$0xff] }
  0x17   :  { %191 = vmatpush.msra.mxu1 %v56_v42  ;;  %212 = vmatpush.msra.mxu2 %v71_v43  ;;  %v50_v3 = vld [vmem:[%s956_s2 + $0x80] sm:$0xff]  ;;  %v112_v5 = vld [vmem:[%s956_s2 + $0x270] sm:$0xff]  ;;  %v129_v6 = vld [vmem:[%s956_s2 + $0x2f8] sm:$0xff] }
  0x18   :  { %231 = vmatpush.msra.mxu3 %v88_v44  ;;  %173 = vmatpush.msra.mxu0 %v38_v45  ;;  %v82_v4 = vld [vmem:[%s956_s2 + $0x180] sm:$0xff]  ;;  %v144_v7 = vld [vmem:[%s956_s2 + $0x370] sm:$0xff]  ;;  %v161_v8 = vld [vmem:[%s956_s2 + $0x3f8] sm:$0xff] }
  0x19   :  { %192 = vmatpush.msra.mxu1 %v55_v46  ;;  %213 = vmatpush.msra.mxu2 %v70_v47  ;;  %v111_v9 = vld [vmem:[%s956_s2 + $0x268] sm:$0xff]  ;;  %v128_v10 = vld [vmem:[%s956_s2 + $0x2f0] sm:$0xff]  ;;  %v110_v13 = vld [vmem:[%s956_s2 + $0x260] sm:$0xff] }
  0x1a   :  { %232 = vmatpush.msra.mxu3 %v87_v48  ;;  %174 = vmatpush.msra.mxu0 %v37_v49  ;;  %v143_v11 = vld [vmem:[%s956_s2 + $0x368] sm:$0xff]  ;;  %v160_v12 = vld [vmem:[%s956_s2 + $0x3f0] sm:$0xff]  ;;  %v142_v15 = vld [vmem:[%s956_s2 + $0x360] sm:$0xff] }
  0x1b   :  { %193 = vmatpush.msra.mxu1 %v54_v50  ;;  %214 = vmatpush.msra.mxu2 %v69_v51  ;;  %v127_v14 = vld [vmem:[%s956_s2 + $0x2e8] sm:$0xff]  ;;  %v109_v17 = vld [vmem:[%s956_s2 + $0x258] sm:$0xff]  ;;  %v126_v18 = vld [vmem:[%s956_s2 + $0x2e0] sm:$0xff] }
  0x1c   :  { %233 = vmatpush.msra.mxu3 %v86_v52  ;;  %175 = vmatpush.msra.mxu0 %v36_v53  ;;  %v159_v16 = vld [vmem:[%s956_s2 + $0x3e8] sm:$0xff]  ;;  %v141_v19 = vld [vmem:[%s956_s2 + $0x358] sm:$0xff]  ;;  %v158_v20 = vld [vmem:[%s956_s2 + $0x3e0] sm:$0xff] }
  0x1d   :  { %194 = vmatpush.msra.mxu1 %v53_v54  ;;  %215 = vmatpush.msra.mxu2 %v68_v55  ;;  %v108_v21 = vld [vmem:[%s956_s2 + $0x250] sm:$0xff]  ;;  %v125_v22 = vld [vmem:[%s956_s2 + $0x2d8] sm:$0xff]  ;;  %v107_v25 = vld [vmem:[%s956_s2 + $0x248] sm:$0xff] }
  0x1e   :  { %234 = vmatpush.msra.mxu3 %v85_v56  ;;  %176 = vmatpush.msra.mxu0 %v35_v57  ;;  %v140_v23 = vld [vmem:[%s956_s2 + $0x350] sm:$0xff]  ;;  %v157_v24 = vld [vmem:[%s956_s2 + $0x3d8] sm:$0xff]  ;;  %v139_v27 = vld [vmem:[%s956_s2 + $0x348] sm:$0xff] }
  0x1f   :  { %195 = vmatpush.msra.mxu1 %v52_v58  ;;  %216 = vmatpush.msra.mxu2 %v67_v59  ;;  %v124_v26 = vld [vmem:[%s956_s2 + $0x2d0] sm:$0xff]  ;;  %v106_v29 = vld [vmem:[%s956_s2 + $0x240] sm:$0xff]  ;;  %v123_v30 = vld [vmem:[%s956_s2 + $0x2c8] sm:$0xff] }
  0x20   :  { %235 = vmatpush.msra.mxu3 %v84_v60  ;;  %177 = vmatpush.msra.mxu0 %v34_v61  ;;  %v156_v28 = vld [vmem:[%s956_s2 + $0x3d0] sm:$0xff]  ;;  %v138_v31 = vld [vmem:[%s956_s2 + $0x340] sm:$0xff]  ;;  %v155_v32 = vld [vmem:[%s956_s2 + $0x3c8] sm:$0xff] }
  0x21   :  { %196 = vmatpush.msra.mxu1 %v51_v62  ;;  %217 = vmatpush.msra.mxu2 %v66_v63  ;;  %v105_v33 = vld [vmem:[%s956_s2 + $0x238] sm:$0xff] }
  0x22   :  { %236 = vmatpush.msra.mxu3 %v83_v0  ;;  %242 = vmatpush.msrb.mxu0 %v113_v1 }
  0x23   :  { %282 = vmatpush.msrb.mxu2 %v145_v2  ;;  %197 = vmatpush.msra.mxu1 %v50_v3 }
  0x24   :  { %237 = vmatpush.msra.mxu3 %v82_v4  ;;  %243 = vmatpush.msrb.mxu0 %v112_v5 }
  0x25   :  { %262 = vmatpush.msrb.mxu1 %v129_v6  ;;  %283 = vmatpush.msrb.mxu2 %v144_v7 }
  0x26   :  { %302 = vmatpush.msrb.mxu3 %v161_v8  ;;  %244 = vmatpush.msrb.mxu0 %v111_v9 }
  0x27   :  { %263 = vmatpush.msrb.mxu1 %v128_v10  ;;  %284 = vmatpush.msrb.mxu2 %v143_v11 }
  0x28   :  { %303 = vmatpush.msrb.mxu3 %v160_v12  ;;  %245 = vmatpush.msrb.mxu0 %v110_v13 }
  0x29   :  { %264 = vmatpush.msrb.mxu1 %v127_v14  ;;  %285 = vmatpush.msrb.mxu2 %v142_v15 }
  0x2a   :  { %304 = vmatpush.msrb.mxu3 %v159_v16  ;;  %246 = vmatpush.msrb.mxu0 %v109_v17 }
  0x2b   :  { %265 = vmatpush.msrb.mxu1 %v126_v18  ;;  %286 = vmatpush.msrb.mxu2 %v141_v19 }
  0x2c   :  { %305 = vmatpush.msrb.mxu3 %v158_v20  ;;  %247 = vmatpush.msrb.mxu0 %v108_v21 }
  0x2d   :  { %266 = vmatpush.msrb.mxu1 %v125_v22  ;;  %287 = vmatpush.msrb.mxu2 %v140_v23 }
  0x2e   :  { %306 = vmatpush.msrb.mxu3 %v157_v24  ;;  %248 = vmatpush.msrb.mxu0 %v107_v25 }
  0x2f   :  { %267 = vmatpush.msrb.mxu1 %v124_v26  ;;  %288 = vmatpush.msrb.mxu2 %v139_v27 }
  0x30   :  { %12 = vsyncpa [#allocation4], 0  ;;  %307 = vmatpush.msrb.mxu3 %v156_v28  ;;  %249 = vmatpush.msrb.mxu0 %v106_v29  ;;  %v122_v34 = vld [vmem:[%s956_s2 + $0x2c0] sm:$0xff]  ;;  %v137_v35 = vld [vmem:[%s956_s2 + $0x338] sm:$0xff]  ;;  %v322_v11 = vlaneseq  ;;  %v485_v14 = vmov 0.0   ;;  %vm331_vm1 = vcmask 64512  }
  0x31   :  { %268 = vmatpush.msrb.mxu1 %v123_v30  ;;  %289 = vmatpush.msrb.mxu2 %v138_v31  ;;  %v154_v36 = vld [vmem:[%s956_s2 + $0x3c0] sm:$0xff]  ;;  %v104_v37 = vld [vmem:[%s956_s2 + $0x230] sm:$0xff]  ;;  %v121_v38 = vld [vmem:[%s956_s2 + $0x2b8] sm:$0xff]  ;;  %v486_v18 = vmov 1.0   ;;  %s357_s13 = ssub.f32 1.0, %s954_s0  ;;  %vm366_vm3 = vcmask 130048  }
  0x32   :  { %308 = vmatpush.msrb.mxu3 %v155_v32  ;;  %250 = vmatpush.msrb.mxu0 %v105_v33  ;;  %v136_v39 = vld [vmem:[%s956_s2 + $0x330] sm:$0xff]  ;;  %v153_v40 = vld [vmem:[%s956_s2 + $0x3b8] sm:$0xff]  ;;  %v103_v41 = vld [vmem:[%s956_s2 + $0x228] sm:$0xff]  ;;  %v323_v13 = vand.u32 127, %v322_v11  ;;  %s432_s21 = sshll.u32 %s960_s6, 4  ;;  %vm423_vm4 = vcmask 0   ;;  %s433_s21 = int_to_ptr.hbm [resolvable:$true] %s432_s21 }
  0x33   :  { %269 = vmatpush.msrb.mxu1 %v122_v34  ;;  %290 = vmatpush.msrb.mxu2 %v137_v35  ;;  %v120_v42 = vld [vmem:[%s956_s2 + $0x2b0] sm:$0xff]  ;;  %v135_v43 = vld [vmem:[%s956_s2 + $0x328] sm:$0xff]  ;;  %v102_v46 = vld [vmem:[%s956_s2 + $0x220] sm:$0xff]  ;;  %v355_v34 = vstv %s954_s0 }
  0x34   :  { %309 = vmatpush.msrb.mxu3 %v154_v36  ;;  %251 = vmatpush.msrb.mxu0 %v104_v37  ;;  %v152_v44 = vld [vmem:[%s956_s2 + $0x3b0] sm:$0xff]  ;;  %v119_v47 = vld [vmem:[%s956_s2 + $0x2a8] sm:$0xff]  ;;  %v134_v48 = vld [vmem:[%s956_s2 + $0x320] sm:$0xff]  ;;  %v358_v35 = vstv %s357_s13 }
  0x35   :  { %270 = vmatpush.msrb.mxu1 %v121_v38  ;;  %291 = vmatpush.msrb.mxu2 %v136_v39  ;;  %v28_v45 = vld [vmem:[%s955_s1 + $0x10] sm:$0xff]  ;;  %v151_v49 = vld [vmem:[%s956_s2 + $0x3a8] sm:$0xff]  ;;  %v26_v50 = vld [vmem:[%s955_s1] sm:$0xff] }
  0x36   :  { %310 = vmatpush.msrb.mxu3 %v153_v40  ;;  %252 = vmatpush.msrb.mxu0 %v103_v41  ;;  %v29_v51 = vld [vmem:[%s955_s1 + $0x18] sm:$0xff]  ;;  %v118_v53 = vld [vmem:[%s956_s2 + $0x2a0] sm:$0xff]  ;;  %v27_v56 = vld [vmem:[%s955_s1 + $0x8] sm:$0xff] }
  0x37   :  { %271 = vmatpush.msrb.mxu1 %v120_v42  ;;  %292 = vmatpush.msrb.mxu2 %v135_v43  ;;  %v101_v52 = vld [vmem:[%s956_s2 + $0x218] sm:$0xff]  ;;  %v150_v55 = vld [vmem:[%s956_s2 + $0x3a0] sm:$0xff]  ;;  %v100_v57 = vld [vmem:[%s956_s2 + $0x210] sm:$0xff] }
  0x38   :  { %311 = vmatpush.msrb.mxu3 %v152_v44  ;;  %218 = vmatmul.f32.vlgmr.msra.gmra.mxu2 %v28_v45  ;;  %v133_v54 = vld [vmem:[%s956_s2 + $0x318] sm:$0xff]  ;;  %v132_v59 = vld [vmem:[%s956_s2 + $0x310] sm:$0xff]  ;;  %v99_v61 = vld [vmem:[%s956_s2 + $0x208] sm:$0xff] }
  0x39   :  { %253 = vmatpush.msrb.mxu0 %v102_v46  ;;  %272 = vmatpush.msrb.mxu1 %v119_v47  ;;  %v117_v58 = vld [vmem:[%s956_s2 + $0x298] sm:$0xff]  ;;  %v116_v62 = vld [vmem:[%s956_s2 + $0x290] sm:$0xff]  ;;  %v131_v63 = vld [vmem:[%s956_s2 + $0x308] sm:$0xff] }
  0x3a   :  { %293 = vmatpush.msrb.mxu2 %v134_v48  ;;  %312 = vmatpush.msrb.mxu3 %v151_v49  ;;  %v149_v60 = vld [vmem:[%s956_s2 + $0x398] sm:$0xff]  ;;  %v148_v0 = vld [vmem:[%s956_s2 + $0x390] sm:$0xff]  ;;  %v98_v1 = vld [vmem:[%s956_s2 + $0x200] sm:$0xff] }
  0x3b   :  { %178 = vmatmul.f32.vlgmr.msra.gmra.mxu0 %v26_v50  ;;  %238 = vmatmul.f32.vlgmr.msra.gmra.mxu3 %v29_v51  ;;  %v115_v2 = vld [vmem:[%s956_s2 + $0x288] sm:$0xff]  ;;  %v130_v3 = vld [vmem:[%s956_s2 + $0x300] sm:$0xff]  ;;  %v32_v6 = vld [vmem:[%s955_s1 + $0x30] sm:$0xff] }
  0x3c   :  { %254 = vmatpush.msrb.mxu0 %v101_v52  ;;  %273 = vmatpush.msrb.mxu1 %v118_v53  ;;  %v147_v4 = vld [vmem:[%s956_s2 + $0x388] sm:$0xff]  ;;  %v30_v5 = vld [vmem:[%s955_s1 + $0x20] sm:$0xff]  ;;  %v33_v10 = vld [vmem:[%s955_s1 + $0x38] sm:$0xff] }
  0x3d   :  { %294 = vmatpush.msrb.mxu2 %v133_v54  ;;  %313 = vmatpush.msrb.mxu3 %v150_v55  ;;  %v114_v7 = vld [vmem:[%s956_s2 + $0x280] sm:$0xff]  ;;  %v31_v9 = vld [vmem:[%s955_s1 + $0x28] sm:$0xff] }
  0x3e   :  { %198 = vmatmul.f32.vlgmr.msra.gmra.mxu1 %v27_v56  ;;  %255 = vmatpush.msrb.mxu0 %v100_v57  ;;  %v146_v8 = vld [vmem:[%s956_s2 + $0x380] sm:$0xff] }
  0x3f   :  { %274 = vmatpush.msrb.mxu1 %v117_v58  ;;  %295 = vmatpush.msrb.mxu2 %v132_v59  ;;  %v453_v39 = vld [vmem:[%s957_s3] ss:$0 sm:$0xff]  ;;  %s487_s3 = smov [#allocation3]  }
  0x40   :  { %314 = vmatpush.msrb.mxu3 %v149_v60  ;;  %256 = vmatpush.msrb.mxu0 %v99_v61  ;;  %s430_s18 = sshll.u32 %s487_s3, 4  ;;  %s431_s18 = int_to_ptr.vmem [resolvable:$true] %s430_s18 }
  0x41   :  { %275 = vmatpush.msrb.mxu1 %v116_v62  ;;  %296 = vmatpush.msrb.mxu2 %v131_v63 }
  0x42   :  { %315 = vmatpush.msrb.mxu3 %v148_v0  ;;  %257 = vmatpush.msrb.mxu0 %v98_v1 }
  0x43   :  { %276 = vmatpush.msrb.mxu1 %v115_v2  ;;  %297 = vmatpush.msrb.mxu2 %v130_v3 }
  0x44   :  { %316 = vmatpush.msrb.mxu3 %v147_v4  ;;  %258 = vmatmul.f32.vlgmr.msrb.gmra.mxu0 %v30_v5 }
  0x45   :  { %298 = vmatmul.f32.vlgmr.msrb.gmra.mxu2 %v32_v6  ;;  %277 = vmatpush.msrb.mxu1 %v114_v7 }
  0x46   :  { %317 = vmatpush.msrb.mxu3 %v146_v8  ;;  %278 = vmatmul.f32.vlgmr.msrb.gmra.mxu1 %v31_v9 }
  0x47   :  { %318 = vmatmul.f32.vlgmr.msrb.gmra.mxu3 %v33_v10 }
  0x74   :  { %v327_v12 = vpop.permute.xlu0 %326 }
  0x75   :  { %vm328_vm0 = vcmp.eq.s32.totalorder %v323_v13, %v327_v12 }
  0x76   :  { %v441_v15 = vsel %vm328_vm0, 1.0, %v485_v14 }
  0x7e   :  { %v382_v16 = vpop.permute.xlu0 %381 }
  0x7f   :  { %vm383_vm2 = vcmp.eq.s32.totalorder %v323_v13, %v382_v16 }
  0x80   :  { %v443_v17 = vsel %vm383_vm2, 1.0, %v485_v14  ;;  %444 = vmatpush.msk.msra.mxu1 %vm383_vm2, %v486_v18 }
  0x81   :  { %445 = vmatmul.msk.f32.vlgmr.msra.gmra.mxu1 %vm331_vm1, %v441_v15  ;;  %v406_v52 = vmul.f32 %v443_v17, %v355_v34 }
  0xb8   :  { %v179_v19 = vpop.f32.mrf.mxu0 }
  0xbb   :  { %v199_v20 = vpop.f32.mrf.mxu1  ;;  %v219_v21 = vpop.f32.mrf.mxu2 }
  0xbc   :  { %v200_v22 = vadd.f32 %v199_v20, %v179_v19 }
  0xbe   :  { %v220_v23 = vadd.f32 %v219_v21, %v200_v22  ;;  %v239_v24 = vpop.f32.mrf.mxu3 }
  0xc0   :  { %v240_v25 = vadd.f32 %v239_v24, %v220_v23 }
  0xc1   :  { %v259_v26 = vpop.f32.mrf.mxu0 }
  0xc2   :  { %v260_v27 = vadd.f32 %v259_v26, %v240_v25 }
  0xc3   :  { %v279_v28 = vpop.f32.mrf.mxu1 }
  0xc4   :  { %v280_v29 = vadd.f32 %v279_v28, %v260_v27 }
  0xc8   :  { %v299_v30 = vpop.f32.mrf.mxu2 }
  0xc9   :  { %v300_v31 = vadd.f32 %v299_v30, %v280_v29 }
  0xca   :  { %v319_v32 = vpop.f32.mrf.mxu3 }
  0xcb   :  { %v320_v33 = vadd.f32 %v319_v32, %v300_v31 }
  0xcd   :  { %350 = vmatpush.msra.mxu0 %v320_v33  ;;  %v356_v37 = vmul.f32 %v355_v34, %v320_v33 }
  0xce   :  { %442 = vmatmul.msk.f32.vlgmr.msra.gmra.mxu0 %vm331_vm1, %v441_v15 }
  0xfe   :  { %v403_v49 = vpop.f32.mrf.mxu1 }
  0xff   :  { %v407_v50 = vmul.f32 %v403_v49, %v358_v35 }
 0x101   :  { %v408_v54 = vadd.f32 %v407_v50, %v406_v52 }
 0x14b   :  { %v352_v36 = vpop.f32.mrf.mxu0 }
 0x14c   :  { %v359_v38 = vmul.f32 %v358_v35, %v352_v36 }
 0x14e   :  { %v360_v40 = vadd.f32 %v359_v38, %v356_v37 }
 0x150   :  { %v365_v41 = vadd.f32 %v453_v39, %v360_v40 }
 0x152   :  { %v367_v42 = vsel %vm366_vm3, %v365_v41, -inf }
 0x153   :  { %368 = vmax.xlane.f32.xlu1 %v367_v42 }
 0x1c6   :  { %v369_v43 = vpop.xlane.xlu1 %368 }
 0x1c7   :  { %v370_v44 = vsub.f32 %v365_v41, %v369_v43 }
 0x1c9   :  { %v371_v45 = vmul.f32 1.442695, %v370_v44 }
 0x1cb   :  { %454 = vpow2.f32 %v371_v45 }
 0x1d1   :  { %v455_v46 = vpop.eup %454 }
 0x1d2   :  { %v373_v47 = vsel %vm366_vm3, %v455_v46, 0.0 }
 0x1d3   :  { %374 = vadd.xlane.f32.xlu1 %v373_v47 }
 0x246   :  { %v375_v48 = vpop.xlane.xlu1 %374 }
 0x247   :  { %456 = vlog2.f32 %v375_v48 }
 0x24d   :  { %v457_v51 = vpop.eup %456 }
 0x24e   :  { %v377_v53 = vmul.f32 0.6931472, %v457_v51 }
 0x250   :  { %v378_v55 = vsub.f32 %v370_v44, %v377_v53 }
 0x252   :  { %v409_v56 = vmul.f32 %v408_v54, %v378_v55 }
 0x254   :  { %v410_v57 = vsel %vm366_vm3, %v409_v56, 0.0 }
 0x255   :  { %411 = vadd.xlane.f32.xlu2 %v410_v57 }
 0x2c8   :  { %v412_v58 = vpop.xlane.xlu2 %411 }
 0x2c9   :  { %v413_v59 = vrot.slane %v412_v58, 4 }
 0x2cb   :  { %v414_v60 = vadd.f32 %v413_v59, %v412_v58 }
 0x2cd   :  { %v415_v61 = vrot.slane %v414_v60, 2 }
 0x2cf   :  { %v416_v62 = vadd.f32 %v415_v61, %v414_v60 }
 0x2d1   :  { %v417_v63 = vrot.slane %v416_v62, 1 }
 0x2d3   :  { %v418_v0 = vadd.f32 %v417_v63, %v416_v62 }
 0x2d5   :  { %446 = vpush %v418_v0 }
 0x306   :  { %s447_s0 = spop %446 }
 0x307   :  { %s420_s5 = ssub.f32 0.0, %s447_s0 }
 0x309   :  { %s421_s22 = smul.f32 0.125, %s420_s5 }
 0x30b   :  { %v422_v1 = vstv %s421_s22 }
 0x30c   :  { %424 = vst.msk [vmem:[#allocation3] sm:$0x1] %vm423_vm4, %v422_v1 }
 0x30d   :  { %435 = dma.vmem_to_hbm [thread:$0]  %s431_s18, 16, %s433_s21, [#allocation4]  }
 0x30e   :  { %482 = dma.done.wait [#allocation4], 16  }
 0x30f   :  { %483 = vsyncadd [#allocation4], 4294967280 }
 0x310   :  { %440 = vsyncpa [#allocation4], 1 }

</bundles_post_ra>
